<compile_context>
chip_gen: v7x
topology: tpu7x:2x2x1
jax: 0.10.0
libtpu: 0.0.40
codegen_flags: <defaults>
</compile_context>

<pallas_src>
import functools
import math

import jax
import jax.numpy as jnp
from jax.experimental import pallas as pl
from jax.experimental.pallas import tpu as pltpu


# MXU operand dtype (bf16-native on v5e/v6e/v7x). Accumulation stays float32.
MXU_DTYPE = jnp.bfloat16


# ---------------------------------------------------------------------------
# Fused kernel: relu(bn2(conv2(relu(bn1(conv1(x))))) + x), B images per step.
# ---------------------------------------------------------------------------
def basic_block_kernel(x_ref, w1_ref, s1_ref, b1_ref, w2_ref, s2_ref, b2_ref,
                       o_ref, *, H):
    """Everything stays resident in VMEM / vregs for the whole block.

    x_ref   : (B*H, W*C)     B images stacked along rows (MXU M dim),
                             channels fastest along lanes.
    w*_ref  : (3*W*C, W*C)   banded weights: kx taps + width zero-pad folded
                             in, the 3 ky taps stacked along K.
    s*/b*   : (1, W*C)       folded eval-mode BN scale/bias (tiled W times).
    o_ref   : (B*H, W*C)     lane-dense output block.
    """
    BH, WC = x_ref.shape
    x = x_ref[...]                                            # (BH, WC) f32

    # Per-image top/bottom boundary masks (the padding=1 zero rows).
    row = jax.lax.broadcasted_iota(jnp.int32, (BH, WC), 0) % H
    not_top = row != 0
    not_bot = row != (H - 1)

    def conv3x3(v, w_ref):
        # Row-shifted copies (XLU sublane roll, per-image boundary rows
        # zeroed) provide the ky = 0 / 2 taps; ky is folded into K, so each
        # conv is a single MXU push with K = 3*WC.
        zero = jnp.zeros_like(v)
        v_up = jnp.where(not_top, pltpu.roll(v, shift=1, axis=0), zero)      # r <- v[r-1]
        v_dn = jnp.where(not_bot, pltpu.roll(v, shift=BH - 1, axis=0), zero)  # r <- v[r+1]
        lhs = jnp.concatenate([v_up, v, v_dn], axis=-1).astype(MXU_DTYPE)
        return jnp.dot(lhs, w_ref[...], preferred_element_type=jnp.float32)

    # --- conv1 + bn1 + relu (out1 never leaves VMEM) ------------------------
    out1 = jnp.maximum(conv3x3(x, w1_ref) * s1_ref[...] + b1_ref[...], 0.0)

    # --- conv2 + bn2 + identity shortcut + relu -----------------------------
    out = conv3x3(out1, w2_ref) * s2_ref[...] + b2_ref[...] + x
    o_ref[...] = jnp.maximum(out, 0.0).astype(o_ref.dtype)


# ---------------------------------------------------------------------------
# pallas_call wrapper
# ---------------------------------------------------------------------------
def _pick_images_per_step(N, H, *, target_m=256, max_m=2048, min_steps=4):
    """Image-fold B (dividing N) so B*H fills the MXU M dim (~target_m) while,
    when N is large enough, leaving >= min_steps grid steps for pipelining."""
    divs = [b for b in range(1, N + 1)
            if N % b == 0 and b * H <= max_m and (b * H) % 8 == 0]
    if not divs:
        return N                       # single full-array block (always legal)
    for b in divs:
        if b * H >= target_m and N // b >= min_steps:
            return b
    for b in divs:
        if b * H >= target_m:
            return b
    return divs[-1]


def _basic_block_call(x_slab, p, *, H, B):
    M, WC = x_slab.shape               # M = N*H, WC = W*Cp
    BH = B * H
    steps = M // BH

    kernel = functools.partial(basic_block_kernel, H=H)
    img_spec = pl.BlockSpec((BH, WC), lambda n: (n, 0))
    w_spec = pl.BlockSpec((3 * WC, WC), lambda n: (0, 0))
    v_spec = pl.BlockSpec((1, WC), lambda n: (0, 0))

    # Advisory cost so XLA schedules surrounding ops around the custom call.
    flops = 2 * (2 * M * (3 * WC) * WC)                  # two banded convs
    bytes_accessed = (2 * M * WC * 4                     # x in + out
                      + 2 * 3 * WC * WC * 2              # bf16 banded weights
                      + 4 * WC * 4)                      # BN rows

    # Explicit VMEM budget: double-buffered blocks + compute headroom,
    # clamped under the v7x 64 MiB physical ceiling.
    est = (2 * 2 * BH * WC * 4                           # x / out blocks (x2 buf)
           + 2 * 2 * 3 * WC * WC * 2                     # both weight slabs
           + 2 * 4 * WC * 4                              # BN rows
           + 4 * BH * 3 * WC * 4)                        # lhs / intermediates
    vmem_limit = int(min(64 * 1024 * 1024, max(32 * 1024 * 1024, 2 * est)))

    return pl.pallas_call(
        kernel,
        out_shape=jax.ShapeDtypeStruct((M, WC), jnp.float32),
        grid=(steps,),
        in_specs=[img_spec,                   # x slab (B images per step)
                  w_spec, v_spec, v_spec,     # conv1 banded weights, bn1
                  w_spec, v_spec, v_spec],    # conv2 banded weights, bn2
        out_specs=img_spec,
        compiler_params=pltpu.CompilerParams(
            dimension_semantics=("parallel",),
            vmem_limit_bytes=vmem_limit),
        cost_estimate=pl.CostEstimate(flops=flops, transcendentals=0,
                                      bytes_accessed=bytes_accessed),
    )(x_slab, p["w1b"], p["s1"], p["b1"], p["w2b"], p["s2"], p["b2"])


def basic_block_apply_slab(x_slab, packed, *, H, images_per_step=None):
    """Run the block on the lane-dense (N*H, W*Cp) slab layout (chainable —
    no NCHW<->slab transposes between stacked BasicBlocks)."""
    N = x_slab.shape[0] // H
    B = images_per_step or _pick_images_per_step(N, H)
    return _basic_block_call(x_slab, packed, H=H, B=B)


@jax.jit
def basic_block_forward(x_nchw, packed):
    """BasicBlock forward on NCHW float32 input (identity shortcut).

    The NCHW <-> slab conversion (transpose + channel pad) belongs only at
    network entry/exit; chain blocks through basic_block_apply_slab()."""
    N, C, H, W = x_nchw.shape
    Cp = packed["s1"].shape[1] // W             # lane-padded channel count
    x = jnp.transpose(x_nchw, (0, 2, 3, 1))     # NHWC
    if Cp != C:
        x = jnp.pad(x, ((0, 0), (0, 0), (0, 0), (0, Cp - C)))
    x_slab = x.reshape(N * H, W * Cp)           # lane-dense rows
    out_slab = basic_block_apply_slab(x_slab, packed, H=H)
    out = out_slab.reshape(N, H, W, Cp)[..., :C]
    return jnp.transpose(out, (0, 3, 1, 2))     # -> NCHW


# ---------------------------------------------------------------------------
# Parameter construction / packing (host side, done once)
# ---------------------------------------------------------------------------
def _lane_padded_channels(C, W, max_inflation=2):
    """Smallest Cp >= C with (W*Cp) % 128 == 0 (full vregs, unmasked stores),
    unless that would inflate channels more than max_inflation x."""
    step = 128 // math.gcd(W, 128)
    Cp = ((C + step - 1) // step) * step
    return Cp if Cp <= max_inflation * C else C


def _band_weights(w_hwio, width):
    """Fold kx taps + width-padding into a banded matrix per ky tap, then
    stack the 3 ky taps along K: (3,3,Cin,Cout) -> (3*width*Cin, width*Cout)
    so   conv_rows = [x(r-1) | x(r) | x(r+1)] @ Wb
    reproduces a 3x3 / stride-1 / padding-1 convolution row by row."""
    _, _, cin, cout = w_hwio.shape
    wi = jnp.arange(width)[:, None]               # input column index
    wo = jnp.arange(width)[None, :]               # output column index
    kx = wi - wo + 1                              # tap index, valid in [0, 2]
    valid = (kx >= 0) & (kx <= 2)
    taps = w_hwio[:, jnp.clip(kx, 0, 2)]          # (3, width, width, Cin, Cout)
    taps = taps * valid[None, :, :, None, None]
    taps = jnp.transpose(taps, (0, 1, 3, 2, 4))   # (3, width, Cin, width, Cout)
    return taps.reshape(3 * width * cin, width * cout)


def init_params(key, in_planes, planes, eps=1e-5):
    assert in_planes == planes, "identity-shortcut path only"
    ks = jax.random.split(key, 10)
    w1 = 0.1 * jax.random.normal(ks[0], (3, 3, in_planes, planes), jnp.float32)
    w2 = 0.1 * jax.random.normal(ks[1], (3, 3, planes, planes), jnp.float32)

    def bn(kg, kb, km, kv):
        gamma = 1.0 + 0.1 * jax.random.normal(kg, (planes,), jnp.float32)
        beta = 0.1 * jax.random.normal(kb, (planes,), jnp.float32)
        mean = 0.05 * jax.random.normal(km, (planes,), jnp.float32)
        var = 1.0 + 0.1 * jax.random.uniform(kv, (planes,), jnp.float32)
        scale = gamma / jnp.sqrt(var + eps)        # fold eval-mode BN
        bias = beta - mean * scale
        return scale, bias

    s1, b1 = bn(ks[2], ks[3], ks[4], ks[5])
    s2, b2 = bn(ks[6], ks[7], ks[8], ks[9])
    return {"w1": w1, "w2": w2, "s1": s1, "b1": b1, "s2": s2, "b2": b2}


def pack_params(params, width):
    """Kernel-ready operands: channel-padded banded bf16 weights + lane-tiled
    f32 BN rows.  Padded channels get scale=bias=0, so they stay exactly zero
    through BN, the residual add and the ReLU (dropped by the output slice)."""
    C = params["w1"].shape[2]
    Cp = _lane_padded_channels(C, width)

    def pad_w(w):            # zero input/output channels beyond C
        return jnp.pad(w, ((0, 0), (0, 0), (0, Cp - C), (0, Cp - C)))

    def row(v):              # (C,) -> (1, width*Cp), channels fastest on lanes
        vp = jnp.pad(v, (0, Cp - C))
        return jnp.tile(vp, width).reshape(1, -1).astype(jnp.float32)

    return {
        "w1b": _band_weights(pad_w(params["w1"]), width).astype(MXU_DTYPE),
        "w2b": _band_weights(pad_w(params["w2"]), width).astype(MXU_DTYPE),
        "s1": row(params["s1"]), "b1": row(params["b1"]),
        "s2": row(params["s2"]), "b2": row(params["b2"]),
    }


# ---------------------------------------------------------------------------
# Pure-JAX reference (sanity check)
# ---------------------------------------------------------------------------
def reference_forward(x_nchw, params):
    x = jnp.transpose(x_nchw, (0, 2, 3, 1))

    def conv(inp, w):
        return jax.lax.conv_general_dilated(
            inp, w, window_strides=(1, 1), padding="SAME",
            dimension_numbers=("NHWC", "HWIO", "NHWC"))

    out1 = jnp.maximum(conv(x, params["w1"]) * params["s1"] + params["b1"], 0.0)
    out = conv(out1, params["w2"]) * params["s2"] + params["b2"] + x
    return jnp.transpose(jnp.maximum(out, 0.0), (0, 3, 1, 2))


# ---------------------------------------------------------------------------
if __name__ == "__main__":
    key = jax.random.PRNGKey(0)
    kx, kp = jax.random.split(key)

    N, C, H, W = 2, 4, 16, 16           # in_planes = planes = 4, stride = 1
    x = jax.random.normal(kx, (N, C, H, W), jnp.float32)
    params = init_params(kp, in_planes=C, planes=C)
    packed = pack_params(params, W)     # built once, outside the hot path

    out = jax.block_until_ready(basic_block_forward(x, packed))
    ref = reference_forward(x, params)

    assert out.shape == (N, C, H, W)
    # bf16 MXU operands with f32 accumulation / BN / residual.
    assert jnp.allclose(out, ref, atol=2e-2, rtol=2e-2), "mismatch vs reference"

    print("KERNEL_OK")
</pallas_src>

<mosaic_0001>
module attributes {stable_mosaic.version = 11 : i64} {
  func.func @basic_block_kernel(%arg0: i32, %arg1: memref<32x128xf32, #tpu.memory_space<vmem>>, %arg2: memref<384x128xbf16, #tpu.memory_space<vmem>>, %arg3: memref<1x128xf32, #tpu.memory_space<vmem>>, %arg4: memref<1x128xf32, #tpu.memory_space<vmem>>, %arg5: memref<384x128xbf16, #tpu.memory_space<vmem>>, %arg6: memref<1x128xf32, #tpu.memory_space<vmem>>, %arg7: memref<1x128xf32, #tpu.memory_space<vmem>>, %arg8: memref<32x128xf32, #tpu.memory_space<vmem>>) attributes {dimension_semantics = [#tpu.dimension_semantics<parallel>], iteration_bounds = array<i64: 1>, scalar_prefetch = 0 : i64, scratch_operands = 0 : i64, tpu.core_type = #tpu.core_type<tc>, window_params = [{transform_indices = @transform_0, window_bounds = array<i64: 32, 128>}, {pipeline_mode = #tpu.pipeline_mode<synchronous>, transform_indices = @transform_1, window_bounds = array<i64: 384, 128>}, {pipeline_mode = #tpu.pipeline_mode<synchronous>, transform_indices = @transform_2, window_bounds = array<i64: 1, 128>}, {pipeline_mode = #tpu.pipeline_mode<synchronous>, transform_indices = @transform_3, window_bounds = array<i64: 1, 128>}, {pipeline_mode = #tpu.pipeline_mode<synchronous>, transform_indices = @transform_4, window_bounds = array<i64: 384, 128>}, {pipeline_mode = #tpu.pipeline_mode<synchronous>, transform_indices = @transform_5, window_bounds = array<i64: 1, 128>}, {pipeline_mode = #tpu.pipeline_mode<synchronous>, transform_indices = @transform_6, window_bounds = array<i64: 1, 128>}, {transform_indices = @transform_7, window_bounds = array<i64: 32, 128>}]} {
    %c0 = arith.constant 0 : index
    %c0_0 = arith.constant 0 : index
    %0 = vector.load %arg1[%c0, %c0_0] : memref<32x128xf32, #tpu.memory_space<vmem>>, vector<32x128xf32>
    %1 = tpu.iota {dimensions = array<i32: 0>} : vector<32x128xi32>
    %c16_i32 = arith.constant 16 : i32
    %c0_i32 = arith.constant 0 : i32
    %2 = arith.cmpi eq, %c16_i32, %c0_i32 : i32
    %c1_i32 = arith.constant 1 : i32
    %3 = arith.select %2, %c1_i32, %c16_i32 : i32
    %4 = vector.broadcast %3 : i32 to vector<32x128xi32>
    %5 = arith.remsi %1, %4 : vector<32x128xi32>
    %c0_i32_1 = arith.constant 0 : i32
    %6 = vector.broadcast %c0_i32_1 : i32 to vector<32x128xi32>
    %7 = arith.cmpi ne, %5, %6 : vector<32x128xi32>
    %c0_i32_2 = arith.constant 0 : i32
    %8 = vector.broadcast %c0_i32_2 : i32 to vector<32x128xi32>
    %9 = arith.cmpi slt, %5, %8 : vector<32x128xi32>
    %c0_i32_3 = arith.constant 0 : i32
    %10 = arith.cmpi slt, %3, %c0_i32_3 : i32
    %11 = vector.broadcast %10 : i1 to vector<32x128xi1>
    %12 = vector.broadcast %11 : vector<32x128xi1> to vector<32x128xi1>
    %13 = arith.xori %9, %12 : vector<32x128xi1>
    %14 = arith.andi %13, %7 : vector<32x128xi1>
    %15 = vector.broadcast %3 : i32 to vector<32x128xi32>
    %16 = arith.addi %5, %15 : vector<32x128xi32>
    %17 = arith.select %14, %16, %5 : vector<32x128xi1>, vector<32x128xi32>
    %c0_i32_4 = arith.constant 0 : i32
    %18 = vector.broadcast %c0_i32_4 : i32 to vector<32x128xi32>
    %19 = arith.cmpi ne, %17, %18 : vector<32x128xi32>
    %c15_i32 = arith.constant 15 : i32
    %20 = vector.broadcast %c15_i32 : i32 to vector<32x128xi32>
    %21 = arith.cmpi ne, %17, %20 : vector<32x128xi32>
    %cst = arith.constant 0.000000e+00 : f32
    %22 = vector.broadcast %cst : f32 to vector<32x128xf32>
    %c1_i32_5 = arith.constant 1 : i32
    %23 = tpu.dynamic_rotate %0 by %c1_i32_5 dim 0 : vector<32x128xf32>, i32 -> vector<32x128xf32>
    %24 = arith.select %19, %23, %22 : vector<32x128xi1>, vector<32x128xf32>
    %c31_i32 = arith.constant 31 : i32
    %25 = tpu.dynamic_rotate %0 by %c31_i32 dim 0 : vector<32x128xf32>, i32 -> vector<32x128xf32>
    %26 = arith.select %21, %25, %22 : vector<32x128xi1>, vector<32x128xf32>
    %27 = tpu.concatenate %24, %0, %26 in 1 : vector<32x128xf32>, vector<32x128xf32>, vector<32x128xf32> -> vector<32x384xf32>
    %28 = arith.truncf %27 : vector<32x384xf32> to vector<32x384xbf16>
    %c0_6 = arith.constant 0 : index
    %c0_7 = arith.constant 0 : index
    %29 = vector.load %arg2[%c0_6, %c0_7] : memref<384x128xbf16, #tpu.memory_space<vmem>>, vector<384x128xbf16>
    %cst_8 = arith.constant dense<0.000000e+00> : vector<32x128xf32>
    %30 = tpu.matmul %28, %29, %cst_8 {dimension_numbers = #tpu.dot_dimension_numbers<[1], [0], [0], [1], [0, 0, 1, 1], [], []>} : vector<32x384xbf16>, vector<384x128xbf16>, vector<32x128xf32> -> vector<32x128xf32>
    %c0_9 = arith.constant 0 : index
    %c0_10 = arith.constant 0 : index
    %31 = vector.load %arg3[%c0_9, %c0_10] : memref<1x128xf32, #tpu.memory_space<vmem>>, vector<1x128xf32>
    %32 = vector.broadcast %31 : vector<1x128xf32> to vector<32x128xf32>
    %33 = arith.mulf %30, %32 : vector<32x128xf32>
    %c0_11 = arith.constant 0 : index
    %c0_12 = arith.constant 0 : index
    %34 = vector.load %arg4[%c0_11, %c0_12] : memref<1x128xf32, #tpu.memory_space<vmem>>, vector<1x128xf32>
    %35 = vector.broadcast %34 : vector<1x128xf32> to vector<32x128xf32>
    %36 = arith.addf %33, %35 : vector<32x128xf32>
    %cst_13 = arith.constant 0.000000e+00 : f32
    %37 = vector.broadcast %cst_13 : f32 to vector<32x128xf32>
    %38 = arith.maximumf %36, %37 : vector<32x128xf32>
    %cst_14 = arith.constant 0.000000e+00 : f32
    %39 = vector.broadcast %cst_14 : f32 to vector<32x128xf32>
    %c1_i32_15 = arith.constant 1 : i32
    %40 = tpu.dynamic_rotate %38 by %c1_i32_15 dim 0 : vector<32x128xf32>, i32 -> vector<32x128xf32>
    %41 = arith.select %19, %40, %39 : vector<32x128xi1>, vector<32x128xf32>
    %c31_i32_16 = arith.constant 31 : i32
    %42 = tpu.dynamic_rotate %38 by %c31_i32_16 dim 0 : vector<32x128xf32>, i32 -> vector<32x128xf32>
    %43 = arith.select %21, %42, %39 : vector<32x128xi1>, vector<32x128xf32>
    %44 = tpu.concatenate %41, %38, %43 in 1 : vector<32x128xf32>, vector<32x128xf32>, vector<32x128xf32> -> vector<32x384xf32>
    %45 = arith.truncf %44 : vector<32x384xf32> to vector<32x384xbf16>
    %c0_17 = arith.constant 0 : index
    %c0_18 = arith.constant 0 : index
    %46 = vector.load %arg5[%c0_17, %c0_18] : memref<384x128xbf16, #tpu.memory_space<vmem>>, vector<384x128xbf16>
    %cst_19 = arith.constant dense<0.000000e+00> : vector<32x128xf32>
    %47 = tpu.matmul %45, %46, %cst_19 {dimension_numbers = #tpu.dot_dimension_numbers<[1], [0], [0], [1], [0, 0, 1, 1], [], []>} : vector<32x384xbf16>, vector<384x128xbf16>, vector<32x128xf32> -> vector<32x128xf32>
    %c0_20 = arith.constant 0 : index
    %c0_21 = arith.constant 0 : index
    %48 = vector.load %arg6[%c0_20, %c0_21] : memref<1x128xf32, #tpu.memory_space<vmem>>, vector<1x128xf32>
    %49 = vector.broadcast %48 : vector<1x128xf32> to vector<32x128xf32>
    %50 = arith.mulf %47, %49 : vector<32x128xf32>
    %c0_22 = arith.constant 0 : index
    %c0_23 = arith.constant 0 : index
    %51 = vector.load %arg7[%c0_22, %c0_23] : memref<1x128xf32, #tpu.memory_space<vmem>>, vector<1x128xf32>
    %52 = vector.broadcast %51 : vector<1x128xf32> to vector<32x128xf32>
    %53 = arith.addf %50, %52 : vector<32x128xf32>
    %54 = arith.addf %53, %0 : vector<32x128xf32>
    %cst_24 = arith.constant 0.000000e+00 : f32
    %55 = vector.broadcast %cst_24 : f32 to vector<32x128xf32>
    %56 = arith.maximumf %54, %55 : vector<32x128xf32>
    %c0_25 = arith.constant 0 : index
    %c0_26 = arith.constant 0 : index
    %57 = vector.load %arg8[%c0_25, %c0_26] : memref<32x128xf32, #tpu.memory_space<vmem>>, vector<32x128xf32>
    tpu.vector_store %arg8[%c0_25, %c0_26], %56 {strides = array<i32>} : memref<32x128xf32, #tpu.memory_space<vmem>>, vector<32x128xf32>,
    return
  }
  func.func @transform_0(%arg0: i32) -> (i32, i32) {
    %c0_i32 = arith.constant 0 : i32
    %c0_i32_0 = arith.constant 0 : i32
    return %arg0, %c0_i32 : i32, i32
  }
  func.func @transform_1(%arg0: i32) -> (i32, i32) {
    %c0_i32 = arith.constant 0 : i32
    %c0_i32_0 = arith.constant 0 : i32
    %c0_i32_1 = arith.constant 0 : i32
    return %c0_i32, %c0_i32_0 : i32, i32
  }
  func.func @transform_2(%arg0: i32) -> (i32, i32) {
    %c0_i32 = arith.constant 0 : i32
    %c0_i32_0 = arith.constant 0 : i32
    %c0_i32_1 = arith.constant 0 : i32
    return %c0_i32, %c0_i32_0 : i32, i32
  }
  func.func @transform_3(%arg0: i32) -> (i32, i32) {
    %c0_i32 = arith.constant 0 : i32
    %c0_i32_0 = arith.constant 0 : i32
    %c0_i32_1 = arith.constant 0 : i32
    return %c0_i32, %c0_i32_0 : i32, i32
  }
  func.func @transform_4(%arg0: i32) -> (i32, i32) {
    %c0_i32 = arith.constant 0 : i32
    %c0_i32_0 = arith.constant 0 : i32
    %c0_i32_1 = arith.constant 0 : i32
    return %c0_i32, %c0_i32_0 : i32, i32
  }
  func.func @transform_5(%arg0: i32) -> (i32, i32) {
    %c0_i32 = arith.constant 0 : i32
    %c0_i32_0 = arith.constant 0 : i32
    %c0_i32_1 = arith.constant 0 : i32
    return %c0_i32, %c0_i32_0 : i32, i32
  }
  func.func @transform_6(%arg0: i32) -> (i32, i32) {
    %c0_i32 = arith.constant 0 : i32
    %c0_i32_0 = arith.constant 0 : i32
    %c0_i32_1 = arith.constant 0 : i32
    return %c0_i32, %c0_i32_0 : i32, i32
  }
  func.func @transform_7(%arg0: i32) -> (i32, i32) {
    %c0_i32 = arith.constant 0 : i32
    %c0_i32_0 = arith.constant 0 : i32
    return %arg0, %c0_i32 : i32, i32
  }
}

</mosaic_0001>

<bundles_post_ra>
// kernel: basic_block_forward.1
= control target key start
LH: loop header
LB: loop body
LE: loop exit
PB: predicated region body
PF: predicated region fallthrough
CT: control target
= control target key end

     0   :  { %v31_v7 = vlaneseq  ;;  %vm1039_vm5 = vmmov 1   ;;  %s1378_s1 = inlined_call_operand.vmem [shape: bf16[384,128], index: 1, kind: input, shape index: {}]   ;;  %s1379_s0 = inlined_call_operand.vmem [shape: f32[32,128], index: 0, kind: input, shape index: {}]   ;;  %s1380_s4 = inlined_call_operand.vmem [shape: bf16[384,128], index: 4, kind: input, shape index: {}]   ;;  %s1381_s2 = inlined_call_operand.vmem [shape: f32[1,128], index: 2, kind: input, shape index: {}]   ;;  %s1382_s3 = inlined_call_operand.vmem [shape: f32[1,128], index: 3, kind: input, shape index: {}]   ;;  %s1383_s5 = inlined_call_operand.vmem [shape: f32[1,128], index: 5, kind: input, shape index: {}]   ;;  %s1384_s6 = inlined_call_operand.vmem [shape: f32[1,128], index: 6, kind: input, shape index: {}]   ;;  %s1385_s7 = inlined_call_operand.vmem [shape: f32[32,128], index: 7, kind: output, shape index: {}]  }
   0x1   :  { %v991_v0 = vld [vmem:[%s1378_s1 + $0x40] sm:$0xff]   ;;  %v994_v3 = vld [vmem:[%s1378_s1 + $0x48] sm:$0xff]   ;;  %v997_v6 = vld [vmem:[%s1378_s1 + $0x50] sm:$0xff]  }
   0x2   :  { %v992_v1 = vld [vmem:[%s1378_s1] sm:$0xff]   ;;  %874 = vmatprep.subr.bf16.mxu0 %v991_v0  ;;  %v995_v4 = vld [vmem:[%s1378_s1 + $0x8] sm:$0xff]   ;;  %v998_v8 = vld [vmem:[%s1378_s1 + $0x10] sm:$0xff]   ;;  %v1113_v12 = vshrl.u32 %v31_v7, 7 }
   0x3   :  { %v993_v2 = vld [vmem:[%s1378_s1 + $0x80] sm:$0xff]   ;;  %875 = vmatpush3.bf16.msra.mxu0 %v992_v1  ;;  %v996_v5 = vld [vmem:[%s1378_s1 + $0x88] sm:$0xff]   ;;  %v999_v9 = vld [vmem:[%s1378_s1 + $0x90] sm:$0xff]  }
   0x4   :  { %950 = vmatprep.subr.bf16.mxu1 %v993_v2  ;;  %876 = vmatprep.subr.bf16.mxu0 %v994_v3  ;;  %v1000_v10 = vld [vmem:[%s1378_s1 + $0x58] sm:$0xff]   ;;  %v1003_v14 = vld [vmem:[%s1378_s1 + $0x60] sm:$0xff]   ;;  %v33_v16 = vadd.s32 8, %v1113_v12  ;;  %v35_v18 = vadd.s32 24, %v1113_v12  ;;  %v1006_v19 = vld [vmem:[%s1378_s1 + $0x68] sm:$0xff]   ;;  %v40_v20 = vand.u32 15, %v1113_v12 }
   0x5   :  { %951 = vmatpush3.bf16.msra.mxu1 %v993_v2  ;;  %v1001_v11 = vld [vmem:[%s1378_s1 + $0x18] sm:$0xff]   ;;  %v1005_v15 = vld [vmem:[%s1378_s1 + $0xa0] sm:$0xff]   ;;  %v1008_v21 = vld [vmem:[%s1378_s1 + $0xa8] sm:$0xff]   ;;  %v34_v26 = vadd.s32 16, %v1113_v12  ;;  %vm96_vm0 = vcmp.lt.s32.totalorder %v1113_v12, 1  ;;  %vm109_vm2 = vcmp.lt.s32.totalorder %v1113_v12, 7 }
   0x6   :  { %952 = vmatprep.subr.bf16.mxu1 %v996_v5  ;;  %v1002_v13 = vld [vmem:[%s1378_s1 + $0x98] sm:$0xff]   ;;  %v1004_v17 = vld [vmem:[%s1378_s1 + $0x20] sm:$0xff]   ;;  %v47_v22 = vand.u32 15, %v33_v16  ;;  %v1007_v23 = vld [vmem:[%s1378_s1 + $0x28] sm:$0xff]   ;;  %v61_v24 = vand.u32 15, %v35_v18  ;;  %vm1150_vm1 = vcmp.ne.s32.totalorder %v40_v20, 0 }
   0x7   :  { %877 = vmatpush3.bf16.msra.mxu0 %v995_v4  ;;  %v1009_v25 = vld [vmem:[%s1378_s1 + $0x70] sm:$0xff]   ;;  %v1012_v30 = vld [vmem:[%s1378_s1 + $0x78] sm:$0xff]   ;;  %v1164_v32 = vld [vmem:[%s1379_s0] sm:$0xff]  ;;  %v54_v37 = vand.u32 15, %v34_v26 }
   0x8   :  { %878 = vmatprep.subr.bf16.mxu0 %v997_v6  ;;  %v1010_v27 = vld [vmem:[%s1378_s1 + $0x30] sm:$0xff]   ;;  %v1014_v31 = vld [vmem:[%s1378_s1 + $0xb8] sm:$0xff]   ;;  %v1169_v33 = vld [vmem:[%s1379_s0 + $0x8] sm:$0xff]  ;;  %vm1176_vm3 = vcmp.ne.s32.totalorder %v47_v22, 15  ;;  %vm1180_vm4 = vcmp.ne.s32.totalorder %v61_v24, 15  ;;  %v92_v38 = vrot.slane %v1164_v32, 7 }
   0x9   :  { %953 = vmatpush3.bf16.msra.mxu1 %v996_v5  ;;  %v1011_v28 = vld [vmem:[%s1378_s1 + $0xb0] sm:$0xff]   ;;  %v1174_v34 = vld [vmem:[%s1379_s0 + $0x18] sm:$0xff]  ;;  %v93_v39 = vrot.slane %v1169_v33, 7  ;;  %v119_v40 = vpack.c.bf16 %v1169_v33, %v1164_v32  ;;  %vm1197_vm6 = vmpackc.low %vm1039_vm5, %vm1150_vm1  ;;  %v105_v44 = vrot.slane %v1164_v32, 1  ;;  %v106_v45 = vrot.slane %v1169_v33, 1 }
   0xa   :  { %954 = vmatprep.subr.bf16.mxu1 %v999_v9  ;;  %v95_v41 = vrot.slane %v1174_v34, 7  ;;  %v1192_v42 = vld [vmem:[%s1379_s0 + $0x10] sm:$0xff]  ;;  %v108_v47 = vrot.slane %v1174_v34, 1  ;;  %v1013_v48 = vld [vmem:[%s1378_s1 + $0x38] sm:$0xff]   ;;  %vm1215_vm7 = vmpackc.low %vm1176_vm3, %vm1039_vm5  ;;  %vm86_vm9 = vcmp.ne.s32.totalorder %v54_v37, 0 }
   0xb   :  { %879 = vmatpush3.bf16.msra.mxu0 %v998_v8  ;;  %v107_v46 = vrot.slane %v1192_v42, 1  ;;  %348 = vmatprep.mubr.bf16.mxu0 %v119_v40  ;;  %v99_v49 = vsel %vm96_vm0, %v92_v38, %v93_v39  ;;  %v112_v53 = vsel %vm109_vm2, %v105_v44, %v106_v45  ;;  %vm1226_vm8 = vmpackc.low %vm1180_vm4, %vm1039_vm5  ;;  %v1015_v55 = vld [vmem:[%s1380_s4 + $0x40] sm:$0xff]   ;;  %v122_v62 = vpack.c.bf16 %v1174_v34, %v1192_v42  ;;  %v1018_v1 = vld [vmem:[%s1380_s4 + $0x48] sm:$0xff]  }
   0xc   :  { %880 = vmatprep.subr.bf16.mxu0 %v1000_v10  ;;  %v100_v50 = vsel %vm96_vm0, %v95_v41, %v92_v38  ;;  %v113_v58 = vsel %vm109_vm2, %v108_v47, %v105_v44  ;;  %v1016_v59 = vld [vmem:[%s1380_s4 + $0x80] sm:$0xff]   ;;  %v94_v63 = vrot.slane %v1192_v42, 7  ;;  %vm1249_vm10 = vmpackc.low %vm1039_vm5, %vm86_vm9  ;;  %v1019_v3 = vld [vmem:[%s1380_s4 + $0x88] sm:$0xff]  }
   0xd   :  { %955 = vmatpush3.bf16.msra.mxu1 %v999_v9  ;;  %v111_v52 = vsel %vm109_vm2, %v106_v45, %v107_v46  ;;  %v110_v57 = vsel %vm109_vm2, %v107_v46, %v108_v47  ;;  %v823_v60 = vpack.c.bf16 %v99_v49, %v100_v50  ;;  %v1017_v61 = vld [vmem:[%s1380_s4] sm:$0xff]   ;;  %v1020_v7 = vld [vmem:[%s1380_s4 + $0x8] sm:$0xff]   ;;  %v1021_v8 = vld [vmem:[%s1380_s4 + $0x50] sm:$0xff]  }
   0xe   :  { %956 = vmatprep.subr.bf16.mxu1 %v1002_v13  ;;  %v829_v56 = vpack.c.bf16 %v111_v52, %v112_v53  ;;  %v832_v2 = vpack.c.bf16 %v113_v58, %v110_v57  ;;  %v97_v4 = vsel %vm96_vm0, %v94_v63, %v95_v41  ;;  %v98_v5 = vsel %vm96_vm0, %v93_v39, %v94_v63  ;;  %v1022_v9 = vld [vmem:[%s1380_s4 + $0x90] sm:$0xff]   ;;  %v1028_v16 = vld [vmem:[%s1380_s4 + $0xa0] sm:$0xff]   ;;  %v1030_v18 = vld [vmem:[%s1380_s4 + $0x68] sm:$0xff]  }
   0xf   :  { %881 = vmatpush3.bf16.msra.mxu0 %v1001_v11  ;;  %v826_v6 = vpack.c.bf16 %v97_v4, %v98_v5  ;;  %v1023_v10 = vld [vmem:[%s1380_s4 + $0x10] sm:$0xff]   ;;  %v1024_v11 = vld [vmem:[%s1380_s4 + $0x58] sm:$0xff]   ;;  %v1032_v20 = vld [vmem:[%s1380_s4 + $0x28] sm:$0xff]  }
  0x10   :  { %882 = vmatprep.subr.bf16.mxu0 %v1003_v14  ;;  %966 = vmatprep.mubr.msk.bf16.mxu1 %vm1215_vm7, %v829_v56  ;;  %v1026_v14 = vld [vmem:[%s1380_s4 + $0x18] sm:$0xff]   ;;  %v1034_v22 = vld [vmem:[%s1380_s4 + $0xb0] sm:$0xff]   ;;  %v834_v37 = vld [vmem:[%s1381_s2] ss:$0 sm:$0xff] }
  0x11   :  { %957 = vmatpush3.bf16.msra.mxu1 %v1002_v13  ;;  %v1025_v13 = vld [vmem:[%s1380_s4 + $0x98] sm:$0xff]   ;;  %v835_v41 = vld [vmem:[%s1382_s3] ss:$0 sm:$0xff] }
  0x12   :  { %958 = vmatprep.subr.bf16.mxu1 %v1005_v15  ;;  %v1036_v24 = vld [vmem:[%s1380_s4 + $0x78] sm:$0xff]   ;;  %v873_v0 = vld [vmem:[%s1384_s6] ss:$0 sm:$0xff] }
  0x13   :  { %883 = vmatpush3.bf16.msra.mxu0 %v1004_v17  ;;  %v1029_v17 = vld [vmem:[%s1380_s4 + $0x20] sm:$0xff]   ;;  %v1038_v26 = vld [vmem:[%s1380_s4 + $0x38] sm:$0xff]  }
  0x14   :  { %884 = vmatprep.subr.bf16.mxu0 %v1006_v19  ;;  %v1031_v19 = vld [vmem:[%s1380_s4 + $0xa8] sm:$0xff]  }
  0x15   :  { %959 = vmatpush3.bf16.msra.mxu1 %v1005_v15  ;;  %v1027_v15 = vld [vmem:[%s1380_s4 + $0x60] sm:$0xff]  }
  0x16   :  { %960 = vmatprep.subr.bf16.mxu1 %v1008_v21 }
  0x17   :  { %885 = vmatpush3.bf16.msra.mxu0 %v1007_v23  ;;  %v1035_v23 = vld [vmem:[%s1380_s4 + $0x30] sm:$0xff]  }
  0x18   :  { %886 = vmatprep.subr.bf16.mxu0 %v1009_v25  ;;  %v1037_v25 = vld [vmem:[%s1380_s4 + $0xb8] sm:$0xff]  }
  0x19   :  { %961 = vmatpush3.bf16.msra.mxu1 %v1008_v21  ;;  %v1033_v21 = vld [vmem:[%s1380_s4 + $0x70] sm:$0xff]  }
  0x1a   :  { %962 = vmatprep.subr.bf16.mxu1 %v1011_v28 }
  0x1b   :  { %887 = vmatpush3.bf16.msra.mxu0 %v1010_v27 }
  0x1c   :  { %888 = vmatprep.subr.bf16.mxu0 %v1012_v30 }
  0x1d   :  { %963 = vmatpush3.bf16.msra.mxu1 %v1011_v28 }
  0x1e   :  { %964 = vmatprep.subr.bf16.mxu1 %v1014_v31 }
  0x1f   :  { %889 = vmatpush3.bf16.msra.mxu0 %v1013_v48 }
  0x20   :  { %912 = vmatprep.subr.bf16.mxu0 %v1015_v55 }
  0x21   :  { %965 = vmatpush3.bf16.msra.mxu1 %v1014_v31 }
  0x22   :  { %824 = vmatmul.mubr.msk.bf16.vlgmr.msra.gmra.mrb[0].mxu0 %vm1197_vm6, %v823_v60  ;;  %970 = vmatprep.subr.bf16.mxu1 %v1016_v59 }
  0x23   :  { %356 = vmatprep.mubr.bf16.mxu0 %v122_v62  ;;  %913 = vmatpush3.bf16.msra.mxu0 %v1017_v61 }
  0x24   :  { %967 = vmatmul.mubr.msk.bf16.vlgmr.msra.gmra.mrb[0].mxu1 %vm1226_vm8, %v832_v2  ;;  %914 = vmatprep.subr.bf16.mxu0 %v1018_v1 }
  0x25   :  { %971 = vmatpush3.bf16.msra.mxu1 %v1016_v59 }
  0x26   :  { %972 = vmatprep.subr.bf16.mxu1 %v1019_v3 }
  0x27   :  { %915 = vmatpush3.bf16.msra.mxu0 %v1020_v7 }
  0x28   :  { %916 = vmatprep.subr.bf16.mxu0 %v1021_v8 }
  0x29   :  { %973 = vmatpush3.bf16.msra.mxu1 %v1019_v3 }
  0x2a   :  { %827 = vmatmul.mubr.msk.bf16.gmra.mrb[4].mxu0 %vm1249_vm10, %v826_v6  ;;  %974 = vmatprep.subr.bf16.mxu1 %v1022_v9 }
  0x2b   :  { %917 = vmatpush3.bf16.msra.mxu0 %v1023_v10 }
  0x2c   :  { %918 = vmatprep.subr.bf16.mxu0 %v1024_v11 }
  0x2d   :  { %975 = vmatpush3.bf16.msra.mxu1 %v1022_v9 }
  0x2e   :  { %976 = vmatprep.subr.bf16.mxu1 %v1025_v13 }
  0x2f   :  { %919 = vmatpush3.bf16.msra.mxu0 %v1026_v14 }
  0x30   :  { %920 = vmatprep.subr.bf16.mxu0 %v1027_v15 }
  0x31   :  { %977 = vmatpush3.bf16.msra.mxu1 %v1025_v13 }
  0x32   :  { %978 = vmatprep.subr.bf16.mxu1 %v1028_v16 }
  0x33   :  { %921 = vmatpush3.bf16.msra.mxu0 %v1029_v17 }
  0x34   :  { %922 = vmatprep.subr.bf16.mxu0 %v1030_v18 }
  0x35   :  { %979 = vmatpush3.bf16.msra.mxu1 %v1028_v16 }
  0x36   :  { %980 = vmatprep.subr.bf16.mxu1 %v1031_v19 }
  0x37   :  { %923 = vmatpush3.bf16.msra.mxu0 %v1032_v20 }
  0x38   :  { %924 = vmatprep.subr.bf16.mxu0 %v1033_v21 }
  0x39   :  { %981 = vmatpush3.bf16.msra.mxu1 %v1031_v19 }
  0x3a   :  { %982 = vmatprep.subr.bf16.mxu1 %v1034_v22 }
  0x3b   :  { %925 = vmatpush3.bf16.msra.mxu0 %v1035_v23 }
  0x3c   :  { %926 = vmatprep.subr.bf16.mxu0 %v1036_v24 }
  0x3d   :  { %983 = vmatpush3.bf16.msra.mxu1 %v1034_v22 }
  0x3e   :  { %984 = vmatprep.subr.bf16.mxu1 %v1037_v25 }
  0x3f   :  { %927 = vmatpush3.bf16.msra.mxu0 %v1038_v26 }
  0x41   :  { %985 = vmatpush3.bf16.msra.mxu1 %v1037_v25 }
  0xf5   :  { %v890_v27 = vpop.f32.mrb[0].mxu0 }
  0xf6   :  { %v891_v28 = vpop.f32.mrb[1].mxu0 }
  0xf7   :  { %v892_v29 = vadd.f32 %v891_v28, %v890_v27  ;;  %v893_v30 = vpop.f32.mrb[2].mxu0  ;;  %v968_v31 = vpop.f32.mrb[0].mxu1 }
  0xf8   :  { %v894_v35 = vpop.f32.mrb[3].mxu0  ;;  %v399_v36 = vpop.f32.mrb[1].mxu1 }
  0xf9   :  { %v895_v38 = vadd.f32 %v894_v35, %v893_v30  ;;  %v400_v39 = vadd.f32 %v892_v29, %v399_v36  ;;  %v969_v40 = vpop.f32.mrb[2].mxu1  ;;  %v872_v36 = vld [vmem:[%s1383_s5] ss:$0 sm:$0xff] }
  0xfa   :  { %v402_v44 = vpop.f32.mrb[3].mxu1 }
  0xfb   :  { %v421_v45 = vmul.f32 %v834_v37, %v400_v39  ;;  %v403_v46 = vadd.f32 %v895_v38, %v402_v44 }
  0xfd   :  { %v432_v47 = vadd.f32 %v835_v41, %v421_v45  ;;  %v422_v48 = vmul.f32 %v834_v37, %v403_v46  ;;  %v896_v49 = vpop.f32.mrb[4].mxu0 }
  0xfe   :  { %v897_v50 = vpop.f32.mrb[5].mxu0 }
  0xff   :  { %v436_v52 = vmax.f32 %v432_v47, 0.0  ;;  %v433_v53 = vadd.f32 %v835_v41, %v422_v48  ;;  %v898_v55 = vadd.f32 %v897_v50, %v896_v49  ;;  %v899_v56 = vpop.f32.mrb[6].mxu0 }
 0x100   :  { %v900_v57 = vpop.f32.mrb[7].mxu0 }
 0x101   :  { %v437_v58 = vmax.f32 %v433_v53, 0.0  ;;  %v408_v59 = vadd.f32 %v968_v31, %v898_v55  ;;  %v440_v60 = vrot.slane %v436_v52, 7  ;;  %v452_v61 = vrot.slane %v436_v52, 1 }
 0x102   :  { %v901_v62 = vadd.f32 %v900_v57, %v899_v56 }
 0x103   :  { %v441_v63 = vrot.slane %v437_v58, 7  ;;  %v453_v1 = vrot.slane %v437_v58, 1  ;;  %v423_v2 = vmul.f32 %v834_v37, %v408_v59  ;;  %v465_v3 = vpack.c.bf16 %v437_v58, %v436_v52 }
 0x104   :  { %v411_v4 = vadd.f32 %v969_v40, %v901_v62 }
 0x105   :  { %v446_v5 = vsel %vm96_vm0, %v440_v60, %v441_v63  ;;  %v434_v6 = vadd.f32 %v835_v41, %v423_v2  ;;  %694 = vmatprep.mubr.bf16.mxu0 %v465_v3  ;;  %v458_v7 = vsel %vm109_vm2, %v452_v61, %v453_v1 }
 0x106   :  { %v424_v8 = vmul.f32 %v834_v37, %v411_v4 }
 0x107   :  { %v438_v9 = vmax.f32 %v434_v6, 0.0 }
 0x108   :  { %v435_v10 = vadd.f32 %v835_v41, %v424_v8 }
 0x109   :  { %v442_v11 = vrot.slane %v438_v9, 7  ;;  %v454_v13 = vrot.slane %v438_v9, 1 }
 0x10a   :  { %v439_v14 = vmax.f32 %v435_v10, 0.0 }
 0x10b   :  { %v457_v15 = vsel %vm109_vm2, %v453_v1, %v454_v13  ;;  %v445_v16 = vsel %vm96_vm0, %v441_v63, %v442_v11 }
 0x10c   :  { %v443_v17 = vrot.slane %v439_v14, 7  ;;  %v455_v18 = vrot.slane %v439_v14, 1  ;;  %v867_v19 = vpack.c.bf16 %v457_v15, %v458_v7  ;;  %v468_v20 = vpack.c.bf16 %v439_v14, %v438_v9 }
 0x10e   :  { %v447_v21 = vsel %vm96_vm0, %v443_v17, %v440_v60  ;;  %986 = vmatprep.mubr.msk.bf16.mxu1 %vm1215_vm7, %v867_v19  ;;  %v456_v22 = vsel %vm109_vm2, %v454_v13, %v455_v18  ;;  %v459_v23 = vsel %vm109_vm2, %v455_v18, %v452_v61  ;;  %v444_v24 = vsel %vm96_vm0, %v442_v11, %v443_v17 }
 0x10f   :  { %v861_v25 = vpack.c.bf16 %v446_v5, %v447_v21  ;;  %v870_v26 = vpack.c.bf16 %v459_v23, %v456_v22  ;;  %v864_v27 = vpack.c.bf16 %v444_v24, %v445_v16 }
 0x111   :  { %862 = vmatmul.mubr.msk.bf16.vlgmr.msra.gmra.mrb[8].mxu0 %vm1197_vm6, %v861_v25  ;;  %987 = vmatmul.mubr.msk.bf16.vlgmr.msra.gmra.mrb[4].mxu1 %vm1226_vm8, %v870_v26 }
 0x112   :  { %702 = vmatprep.mubr.bf16.mxu0 %v468_v20 }
 0x119   :  { %865 = vmatmul.mubr.msk.bf16.gmra.mrb[12].mxu0 %vm1249_vm10, %v864_v27 }
 0x1e4   :  { %v928_v51 = vpop.f32.mrb[8].mxu0  ;;  %v988_v28 = vpop.f32.mrb[4].mxu1 }
 0x1e5   :  { %v929_v29 = vpop.f32.mrb[9].mxu0  ;;  %v745_v30 = vpop.f32.mrb[5].mxu1 }
 0x1e6   :  { %v930_v31 = vadd.f32 %v929_v29, %v928_v51  ;;  %v931_v12 = vpop.f32.mrb[10].mxu0  ;;  %v989_v35 = vpop.f32.mrb[6].mxu1 }
 0x1e7   :  { %v932_v43 = vpop.f32.mrb[11].mxu0  ;;  %v748_v37 = vpop.f32.mrb[7].mxu1 }
 0x1e8   :  { %v746_v38 = vadd.f32 %v930_v31, %v745_v30  ;;  %v933_v54 = vadd.f32 %v932_v43, %v931_v12 }
 0x1ea   :  { %v767_v39 = vmul.f32 %v872_v36, %v746_v38  ;;  %v749_v40 = vadd.f32 %v933_v54, %v748_v37 }
 0x1ec   :  { %v778_v41 = vadd.f32 %v873_v0, %v767_v39  ;;  %v768_v44 = vmul.f32 %v872_v36, %v749_v40  ;;  %v934_v45 = vpop.f32.mrb[12].mxu0 }
 0x1ed   :  { %v935_v46 = vpop.f32.mrb[13].mxu0 }
 0x1ee   :  { %v782_v47 = vadd.f32 %v778_v41, %v1164_v32  ;;  %v779_v48 = vadd.f32 %v873_v0, %v768_v44  ;;  %v936_v49 = vadd.f32 %v935_v46, %v934_v45  ;;  %v937_v50 = vpop.f32.mrb[14].mxu0 }
 0x1ef   :  { %v938_v52 = vpop.f32.mrb[15].mxu0 }
 0x1f0   :  { %v786_v53 = vmax.f32 %v782_v47, 0.0  ;;  %v783_v55 = vadd.f32 %v779_v48, %v1169_v33  ;;  %v754_v56 = vadd.f32 %v988_v28, %v936_v49  ;;  %v939_v57 = vadd.f32 %v938_v52, %v937_v50 }
 0x1f2   :  { %790 = vst [vmem:[%s1385_s7] sm:$0xff] %v786_v53  ;;  %v787_v58 = vmax.f32 %v783_v55, 0.0  ;;  %v769_v59 = vmul.f32 %v872_v36, %v754_v56  ;;  %v757_v60 = vadd.f32 %v989_v35, %v939_v57 }
 0x1f4   :  { %791 = vst [vmem:[%s1385_s7 + $0x8] sm:$0xff] %v787_v58  ;;  %v780_v32 = vadd.f32 %v873_v0, %v769_v59  ;;  %v770_v61 = vmul.f32 %v872_v36, %v757_v60 }
 0x1f6   :  { %v784_v62 = vadd.f32 %v780_v32, %v1192_v42  ;;  %v781_v63 = vadd.f32 %v873_v0, %v770_v61 }
 0x1f8   :  { %v788_v1 = vmax.f32 %v784_v62, 0.0  ;;  %v785_v33 = vadd.f32 %v781_v63, %v1174_v34 }
 0x1fa   :  { %792 = vst [vmem:[%s1385_s7 + $0x10] sm:$0xff] %v788_v1  ;;  %v789_v2 = vmax.f32 %v785_v33, 0.0 }
 0x1fc   :  { %793 = vst [vmem:[%s1385_s7 + $0x18] sm:$0xff] %v789_v2 }

</bundles_post_ra>
